<compile_context>
chip_gen: v7x
topology: tpu7x:2x2x1
jax: 0.10.0
libtpu: 0.0.40
codegen_flags: <defaults>
</compile_context>

<pallas_src>
import jax
import jax.numpy as jnp
from jax.experimental import pallas as pl
from jax.experimental.pallas import tpu as pltpu


def _round_up(v, m):
    return ((v + m - 1) // m) * m


def _vmem_capacity_bytes():
    """Best-effort physical VMEM size; conservative (v7x-sized) fallback."""
    try:
        info = pltpu.get_tpu_info()
        cap = getattr(info, "vmem_capacity_bytes", None)
        if cap:
            return int(cap)
    except Exception:
        pass
    return 64 * 1024 * 1024


def _make_patch_embed_kernel(C, W, KW, sw, Wo):
    """Fused window extraction + single block-diagonal GEMM + bias.

    xr_ref: (TM, C*W)     rows are (b, ho)-major, channel-major columns
    w_ref:  (Wo*C*KW, P)  block-diagonal weight, lanes padded to P (mult of 128)
    b_ref:  (1, P)        bias tiled Wo times, zero-padded to P
    o_ref:  (TM, P)       lanes [wo*E:(wo+1)*E] hold window wo's embedding
    """

    def kernel(xr_ref, w_ref, b_ref, o_ref):
        xr = xr_ref[...]                                   # (TM, C*W)

        # Static overlapping-window extraction (Wo windows, channel-major
        # within each), concatenated ONCE into the GEMM LHS.  At C=1 / small
        # Wo these unaligned lane slices ride the XLU slot for free; if C*Wo
        # ever grows large, hoist this ~KW/sw duplication into the wrapper
        # and feed the kernel an aligned (TM, Wo*C*KW) operand instead.
        cols = []
        for wo in range(Wo):
            base = wo * sw
            for c in range(C):
                cols.append(xr[:, c * W + base: c * W + base + KW])
        lhs = cols[0] if len(cols) == 1 else jnp.concatenate(cols, axis=1)

        # One GEMM covers all Wo windows (off-diagonal weight blocks are 0),
        # followed by a single bias add (no per-window broadcast_in_dim).
        acc = jnp.dot(lhs, w_ref[...], preferred_element_type=jnp.float32)
        o_ref[...] = (acc + b_ref[...]).astype(o_ref.dtype)

    return kernel


def patch_embed_forward(x, weight, bias, img_size, patch_size):
    """x: (B, C, H, W) float32; weight: (E, C, 1, KW); bias: (E,)."""
    B, C, H, W = x.shape
    assert H == img_size[0] and W == img_size[1], (
        f"Input image size ({H}*{W}) doesn't match model "
        f"({img_size[0]}*{img_size[1]})."
    )
    E, Cw, KH, KW = weight.shape
    assert Cw == C and KH == 1
    assert W >= KW, f"W={W} must be >= kernel width {KW}"
    sh, sw = patch_size

    Ho = (H - KH) // sh + 1
    Wo = (W - KW) // sw + 1
    K = C * KW                     # per-window contraction
    KB = Wo * K                    # block-diagonal contraction size
    NE = Wo * E                    # useful output lanes per row
    P = _round_up(NE, 128)         # lane-dense store width

    # ---- static wrapper glue (no gather; fuses to one small copy) ----------
    # Kernel height is 1: keep only rows h = ho*sh, then NCHW -> (B*Ho, C*W).
    x_rows = jax.lax.slice(
        x, (0, 0, 0, 0), (B, C, (Ho - 1) * sh + 1, W), (1, 1, sh, 1)
    )                                                          # (B, C, Ho, W)
    xr = jnp.transpose(x_rows, (0, 2, 1, 3)).reshape(B * Ho, C * W)
    BH = B * Ho

    # ---- chip-aware row-tile sizing -----------------------------------------
    itemsize = 4  # f32 operands
    vmem_cap = _vmem_capacity_bytes()
    # ~60% of physical VMEM: well above the 16/32 MiB scoped defaults on
    # v5e/v6e, still comfortable headroom under v7x's 64 MiB physical.
    vmem_budget = (vmem_cap * 3) // 5

    # Everything actually live in VMEM: resident weight + bias (pipeline keeps
    # two buffers of each), and per row the double-buffered input & output
    # tiles plus the in-kernel LHS and f32 accumulator intermediates.
    fixed_bytes = itemsize * (2 * KB * P + 2 * P)
    per_row_bytes = itemsize * (2 * C * W + 2 * P + KB + 2 * P)
    avail = vmem_budget - fixed_bytes
    tm_cap = max(8, (avail // per_row_bytes) // 8 * 8) if avail > 0 else 8

    TM = min(_round_up(BH, 8), 2048, tm_cap)
    # v7x has 2 TensorCores: for medium/large batches make sure the "parallel"
    # row axis has at least 2 grid steps so both cores get work.
    if BH >= 16:
        TM = min(TM, _round_up((BH + 1) // 2, 8))
    TM = max(TM, 8)
    BH_pad = _round_up(BH, TM)
    if BH_pad > BH:
        xr = jnp.pad(xr, ((0, BH_pad - BH), (0, 0)))

    vmem_limit = int(min(vmem_cap,
                         max(vmem_budget,
                             fixed_bytes + TM * per_row_bytes + (2 << 20))))

    # ---- block-diagonal weight / tiled bias --------------------------------
    # w_mat rows are (c, kw) flattened kw-fastest, matching the LHS column
    # order produced in-kernel.  Block wo sits at rows [wo*K,(wo+1)*K) and
    # cols [wo*E,(wo+1)*E); lane padding columns are zero.
    w_mat = weight.reshape(E, K).T.astype(x.dtype)             # (K, E)
    w_bd = jnp.kron(jnp.eye(Wo, dtype=x.dtype), w_mat)         # (Wo*K, Wo*E)
    b_bd = jnp.tile(bias.astype(x.dtype), Wo)                  # (Wo*E,)
    if P > NE:
        w_bd = jnp.pad(w_bd, ((0, 0), (0, P - NE)))
        b_bd = jnp.pad(b_bd, (0, P - NE))
    b_bd = b_bd.reshape(1, P)

    kernel = _make_patch_embed_kernel(C, W, KW, sw, Wo)

    out_flat = pl.pallas_call(
        kernel,
        out_shape=jax.ShapeDtypeStruct((BH_pad, P), x.dtype),
        grid_spec=pltpu.PrefetchScalarGridSpec(
            num_scalar_prefetch=0,
            grid=(BH_pad // TM,),
            in_specs=[
                pl.BlockSpec((TM, C * W), lambda i: (i, 0)),   # row tile
                pl.BlockSpec((KB, P), lambda i: (0, 0)),       # resident weight
                pl.BlockSpec((1, P), lambda i: (0, 0)),        # resident bias
            ],
            out_specs=pl.BlockSpec((TM, P), lambda i: (i, 0)),
        ),
        compiler_params=pltpu.CompilerParams(
            dimension_semantics=("parallel",),
            vmem_limit_bytes=vmem_limit,
        ),
    )(xr, w_bd, b_bd)

    # Drop row/lane padding (1.33x lane pad at E=32, Wo=3) and restore the
    # (B, Ho*Wo, E) ordering identical to flatten(2).transpose(1, 2).
    out = out_flat[:BH, :NE] if (BH_pad > BH or P > NE) else out_flat
    return out.reshape(B, Ho, Wo, E).reshape(B, Ho * Wo, E)


if __name__ == "__main__":
    # Small shapes consistent with the module: kernel width 36 is hardcoded,
    # so W must be >= 36.  img_size=(33, 68), patch=16, C=1, E=32, B=2.
    img_size = (33, 68)
    patch_size = (16, 16)
    in_chans = 1
    embed_dim = 32
    B = 2
    KW = 36

    key = jax.random.PRNGKey(0)
    kx, kw, kb = jax.random.split(key, 3)

    x = jax.random.normal(kx, (B, in_chans, img_size[0], img_size[1]),
                          dtype=jnp.float32)

    # Deterministic Conv2d-style init (uniform in +/- 1/sqrt(fan_in)).
    fan_in = in_chans * 1 * KW
    bound = 1.0 / (fan_in ** 0.5)
    weight = jax.random.uniform(kw, (embed_dim, in_chans, 1, KW),
                                minval=-bound, maxval=bound, dtype=jnp.float32)
    bias = jax.random.uniform(kb, (embed_dim,),
                              minval=-bound, maxval=bound, dtype=jnp.float32)

    out = patch_embed_forward(x, weight, bias, img_size, patch_size)
    out = jax.block_until_ready(out)

    # Reference: plain-JAX conv (NCHW) + flatten(2).transpose(1, 2)
    ref_conv = jax.lax.conv_general_dilated(
        x, weight, window_strides=patch_size, padding="VALID",
        dimension_numbers=("NCHW", "OIHW", "NCHW"),
    ) + bias[None, :, None, None]
    Bc, Ec, Ho, Wo = ref_conv.shape
    ref = jnp.transpose(ref_conv.reshape(Bc, Ec, Ho * Wo), (0, 2, 1))

    assert out.shape == (B, Ho * Wo, embed_dim), out.shape
    assert jnp.allclose(out, ref, atol=1e-4, rtol=1e-4), "mismatch vs reference"

    print("KERNEL_OK")
</pallas_src>

<mosaic_0001>
module attributes {stable_mosaic.version = 11 : i64} {
  func.func @kernel(%arg0: i32, %arg1: memref<8x68xf32, #tpu.memory_space<vmem>>, %arg2: memref<108x128xf32, #tpu.memory_space<vmem>>, %arg3: memref<1x128xf32, #tpu.memory_space<vmem>>, %arg4: memref<8x128xf32, #tpu.memory_space<vmem>>) attributes {dimension_semantics = [#tpu.dimension_semantics<parallel>], iteration_bounds = array<i64: 1>, scalar_prefetch = 0 : i64, scratch_operands = 0 : i64, tpu.core_type = #tpu.core_type<tc>, window_params = [{transform_indices = @transform_0, window_bounds = array<i64: 8, 68>}, {pipeline_mode = #tpu.pipeline_mode<synchronous>, transform_indices = @transform_1, window_bounds = array<i64: 108, 128>}, {pipeline_mode = #tpu.pipeline_mode<synchronous>, transform_indices = @transform_2, window_bounds = array<i64: 1, 128>}, {transform_indices = @transform_3, window_bounds = array<i64: 8, 128>}]} {
    %c0 = arith.constant 0 : index
    %c0_0 = arith.constant 0 : index
    %0 = vector.load %arg1[%c0, %c0_0] : memref<8x68xf32, #tpu.memory_space<vmem>>, vector<8x68xf32>
    %1 = vector.extract_strided_slice %0 {offsets = [0, 0], sizes = [8, 36], strides = [1, 1]} : vector<8x68xf32> to vector<8x36xf32>
    %2 = vector.extract_strided_slice %0 {offsets = [0, 16], sizes = [8, 36], strides = [1, 1]} : vector<8x68xf32> to vector<8x36xf32>
    %3 = vector.extract_strided_slice %0 {offsets = [0, 32], sizes = [8, 36], strides = [1, 1]} : vector<8x68xf32> to vector<8x36xf32>
    %4 = tpu.concatenate %1, %2, %3 in 1 : vector<8x36xf32>, vector<8x36xf32>, vector<8x36xf32> -> vector<8x108xf32>
    %c0_1 = arith.constant 0 : index
    %c0_2 = arith.constant 0 : index
    %5 = vector.load %arg2[%c0_1, %c0_2] : memref<108x128xf32, #tpu.memory_space<vmem>>, vector<108x128xf32>
    %cst = arith.constant dense<0.000000e+00> : vector<8x128xf32>
    %6 = tpu.matmul %4, %5, %cst {dimension_numbers = #tpu.dot_dimension_numbers<[1], [0], [0], [1], [0, 0, 1, 1], [], []>} : vector<8x108xf32>, vector<108x128xf32>, vector<8x128xf32> -> vector<8x128xf32>
    %c0_3 = arith.constant 0 : index
    %c0_4 = arith.constant 0 : index
    %7 = vector.load %arg3[%c0_3, %c0_4] : memref<1x128xf32, #tpu.memory_space<vmem>>, vector<1x128xf32>
    %8 = vector.broadcast %7 : vector<1x128xf32> to vector<8x128xf32>
    %9 = arith.addf %6, %8 : vector<8x128xf32>
    %c0_5 = arith.constant 0 : index
    %c0_6 = arith.constant 0 : index
    %10 = vector.load %arg4[%c0_5, %c0_6] : memref<8x128xf32, #tpu.memory_space<vmem>>, vector<8x128xf32>
    tpu.vector_store %arg4[%c0_5, %c0_6], %9 {strides = array<i32>} : memref<8x128xf32, #tpu.memory_space<vmem>>, vector<8x128xf32>,
    return
  }
  func.func @transform_0(%arg0: i32) -> (i32, i32) {
    %c0_i32 = arith.constant 0 : i32
    %c0_i32_0 = arith.constant 0 : i32
    return %arg0, %c0_i32 : i32, i32
  }
  func.func @transform_1(%arg0: i32) -> (i32, i32) {
    %c0_i32 = arith.constant 0 : i32
    %c0_i32_0 = arith.constant 0 : i32
    %c0_i32_1 = arith.constant 0 : i32
    return %c0_i32, %c0_i32_0 : i32, i32
  }
  func.func @transform_2(%arg0: i32) -> (i32, i32) {
    %c0_i32 = arith.constant 0 : i32
    %c0_i32_0 = arith.constant 0 : i32
    %c0_i32_1 = arith.constant 0 : i32
    return %c0_i32, %c0_i32_0 : i32, i32
  }
  func.func @transform_3(%arg0: i32) -> (i32, i32) {
    %c0_i32 = arith.constant 0 : i32
    %c0_i32_0 = arith.constant 0 : i32
    return %arg0, %c0_i32 : i32, i32
  }
}

</mosaic_0001>

<bundles_post_ra>
// kernel: tpu_custom_call.1
= control target key start
LH: loop header
LB: loop body
LE: loop exit
PB: predicated region body
PF: predicated region fallthrough
CT: control target
= control target key end

     0   :  { %8 = vsyncpa [#allocation3], 0  ;;  %s400_s0 = inlined_call_operand.hbm [shape: f32[8,68], index: 0, kind: input, shape index: {}]   ;;  %s401_s1 = inlined_call_operand.hbm [shape: f32[108,128], index: 1, kind: input, shape index: {}]   ;;  %s402_s2 = inlined_call_operand.vmem [shape: f32[1,128], index: 2, kind: input, shape index: {}]   ;;  %s403_s3 = inlined_call_operand.hbm [shape: f32[8,128], index: 3, kind: output, shape index: {}]  }
   0x1   :  { %9 = vsyncpa [#allocation6], 0 }
   0x2   :  { %10 = vsyncpa [#allocation4], 0  ;;  %s323_s12 = smov [#allocation2]   ;;  %s324_s14 = smov [#allocation5]  }
   0x3   :  { %s17_s13 = sshll.u32 %s323_s12, 4  ;;  %s26_s15 = sshll.u32 %s324_s14, 4  ;;  %s18_s13 = int_to_ptr.vmem [resolvable:$true] %s17_s13  ;;  %s354_s15 = int_to_ptr.vmem [resolvable:$true] %s26_s15 }
   0x4   :  { %s251_s18 = scalar_lea.hbm %s400_s0, 128 }
   0x5   :  { %p252_p0 = scmp.ne.s32.totalorder %s400_s0, %s251_s18  ;;  %p255_p1 = scmp.lt.u32.totalorder %s251_s18, %s400_s0 }
   0x7   :  { %p257_p2 = pnand %p255_p1, %p252_p0 }
   0x9   :  { %260 = shalt.err (!%p257_p2)
}
   0xa   :  { %s261_s23 = scalar_lea.vmem %s18_s13, 128  ;;  %p266_p4 = scmp.lt.s32.totalorder %s18_s13, %s18_s13 }
   0xb   :  { %p262_p3 = scmp.ne.s32.totalorder %s18_s13, %s261_s23  ;;  %p267_p5 = scmp.lt.s32.totalorder %s261_s23, %s261_s23 }
   0xd   :  { %p268_p6 = por %p267_p5, %p266_p4 }
   0xf   :  { %p269_p7 = pnand %p268_p6, %p262_p3 }
  0x11   :  { %272 = shalt.err (!%p269_p7)
}
  0x12   :  { %20 = dma.hbm_to_vmem [thread:$0]  %s400_s0, 128, %s18_s13, [#allocation3]  }
  0x13   :  { %s273_s28 = scalar_lea.hbm %s401_s1, 1792 }
  0x14   :  { %p274_p8 = scmp.ne.s32.totalorder %s401_s1, %s273_s28  ;;  %p277_p9 = scmp.lt.u32.totalorder %s273_s28, %s401_s1 }
  0x16   :  { %p279_p10 = pnand %p277_p9, %p274_p8 }
  0x18   :  { %282 = shalt.err (!%p279_p10)
}
  0x19   :  { %s283_s6 = scalar_lea.vmem %s354_s15, 1792  ;;  %p288_p12 = scmp.lt.s32.totalorder %s354_s15, %s354_s15 }
  0x1a   :  { %p284_p11 = scmp.ne.s32.totalorder %s354_s15, %s283_s6  ;;  %p289_p13 = scmp.lt.s32.totalorder %s283_s6, %s283_s6 }
  0x1c   :  { %p290_p0 = por %p289_p13, %p288_p12 }
  0x1e   :  { %p291_p1 = pnand %p290_p0, %p284_p11 }
  0x20   :  { %294 = shalt.err (!%p291_p1)
}
  0x21   :  { %s325_s0 = smov 128   ;;  %s326_s7 = smov 8  }
  0x22   :  { %32 = dma.hbm_to_vmem [thread:$0]  %s401_s1, 1792, %s354_s15, [#allocation6], %s325_s0, %s325_s0, %s326_s7  }
  0x23   :  { %317 = dma.done.wait [#allocation3], 128  }
  0x24   :  { %318 = vsyncadd [#allocation3], 4294967168 }
  0x25   :  { %319 = dma.done.wait [#allocation6], 1792  }
  0x26   :  { %320 = vsyncadd [#allocation6], 4294965504  ;;  %v327_v0 = vmov 0.0|0.0   ;;  %vm328_vm0 = vmmov 0   ;;  %v329_v1 = vmov 0.0   ;;  %v41_v2 = vld [vmem:[#allocation2] sm:$0xff] }
  0x27   :  { %218 = vmatprep.subr.bf16.mxu0 %v327_v0  ;;  %215 = vmatprep.mubr.msk.f32.mxu0 %vm328_vm0, %v329_v1  ;;  %v53_v3 = vld [vmem:[#allocation5] sm:$0xff]  ;;  %v54_v4 = vld [vmem:[#allocation5 + $0x8] sm:$0xff]  ;;  %s330_s10 = smov 20   ;;  %v55_v6 = vld [vmem:[#allocation5 + $0x10] sm:$0xff]  ;;  %s331_s1 = smov 40   ;;  %vm78_vm1 = vcmask 1043456  }
  0x28   :  { %43 = vrot.lane.b32.xlu0 %v41_v2, %s330_s10  ;;  %v219_v5 = vpack.c.bf16 %v54_v4, %v53_v3  ;;  %v56_v7 = vld [vmem:[#allocation5 + $0x18] sm:$0xff]  ;;  %v57_v9 = vld [vmem:[#allocation5 + $0x20] sm:$0xff]  ;;  %v58_v10 = vld [vmem:[#allocation5 + $0x28] sm:$0xff]  ;;  %vm332_vm2 = vmmov 1   ;;  %vm49_vm4 = vcmask 293888   ;;  %vm51_vm5 = vcmask 588800  }
  0x29   :  { %v222_v8 = vpack.c.bf16 %v56_v7, %v55_v6  ;;  %v225_v11 = vpack.c.bf16 %v58_v10, %v57_v9  ;;  %v59_v12 = vld [vmem:[#allocation5 + $0x30] sm:$0xff]  ;;  %v60_v13 = vld [vmem:[#allocation5 + $0x38] sm:$0xff]  ;;  %v61_v15 = vld [vmem:[#allocation5 + $0x40] sm:$0xff]  ;;  %vm74_vm6 = vcmask 883712   ;;  %s333_s13 = smov [#allocation7]  }
  0x2a   :  { %220 = vmatpush3.bf16.msra.mxu0 %v219_v5  ;;  %v228_v14 = vpack.c.bf16 %v60_v13, %v59_v12  ;;  %v62_v16 = vld [vmem:[#allocation5 + $0x48] sm:$0xff]  ;;  %v63_v18 = vld [vmem:[#allocation5 + $0x50] sm:$0xff]  ;;  %v64_v19 = vld [vmem:[#allocation5 + $0x58] sm:$0xff]  ;;  %s159_s14 = sshll.u32 %s333_s13, 4  ;;  %s160_s14 = int_to_ptr.vmem [resolvable:$true] %s159_s14 }
  0x2b   :  { %221 = vmatprep.subr.bf16.mxu0 %v327_v0  ;;  %v231_v17 = vpack.c.bf16 %v62_v16, %v61_v15  ;;  %v234_v20 = vpack.c.bf16 %v64_v19, %v63_v18  ;;  %v65_v21 = vld [vmem:[#allocation5 + $0x60] sm:$0xff]  ;;  %v66_v22 = vld [vmem:[#allocation5 + $0x68] sm:$0xf]  ;;  %vm238_vm3 = vmpackc.low %vm78_vm1, %vm332_vm2  ;;  %s295_s15 = scalar_lea.vmem %s160_s14, 128  ;;  %p300_p3 = scmp.lt.s32.totalorder %s160_s14, %s160_s14 }
  0x2c   :  { %46 = vrot.lane.b32.xlu0 %v41_v2, %s331_s1  ;;  %v237_v23 = vpack.c.bf16 %v66_v22, %v65_v21  ;;  %v169_v28 = vld [vmem:[%s402_s2] ss:$0 sm:$0xff]  ;;  %p296_p2 = scmp.ne.s32.totalorder %s160_s14, %s295_s15  ;;  %p301_p4 = scmp.lt.s32.totalorder %s295_s15, %s295_s15 }
  0x2e   :  { %223 = vmatpush3.bf16.msra.mxu0 %v222_v8  ;;  %p302_p5 = por %p301_p4, %p300_p3 }
  0x2f   :  { %224 = vmatprep.subr.bf16.mxu0 %v327_v0 }
  0x30   :  { %p303_p6 = pnand %p302_p5, %p296_p2 }
  0x32   :  { %226 = vmatpush3.bf16.msra.mxu0 %v225_v11 }
  0x33   :  { %227 = vmatprep.subr.bf16.mxu0 %v327_v0 }
  0x36   :  { %229 = vmatpush3.bf16.msra.mxu0 %v228_v14 }
  0x37   :  { %230 = vmatprep.subr.bf16.mxu0 %v327_v0 }
  0x3a   :  { %232 = vmatpush3.bf16.msra.mxu0 %v231_v17 }
  0x3b   :  { %233 = vmatprep.subr.bf16.mxu0 %v327_v0 }
  0x3e   :  { %235 = vmatpush3.bf16.msra.mxu0 %v234_v20 }
  0x3f   :  { %236 = vmatprep.subr.bf16.mxu0 %v327_v0 }
  0x42   :  { %239 = vmatpush3.bf16.msk.msra.mxu0 %vm238_vm3, %v237_v23 }
  0x9a   :  { %v44_v24 = vpop.permute.xlu0 %43 }
  0x9b   :  { %v50_v25 = vsel %vm49_vm4, %v41_v2, %v44_v24 }
  0x9e   :  { %v47_v26 = vpop.permute.xlu0 %46 }
  0x9f   :  { %v52_v27 = vsel %vm51_vm5, %v50_v25, %v47_v26 }
  0xa0   :  { %216 = vmatmul.mubr.msk.f32.vlgmr.msra.gmra.mrb[0].mxu0 %vm74_vm6, %v52_v27 }
 0x173   :  { %v148_v29 = vpop.f32.mrb[0].mxu0 }
 0x174   :  { %v149_v30 = vadd.f32 %v169_v28, %v148_v29  ;;  %v217_v31 = vpop.f32.mrb[1].mxu0 }
 0x176   :  { %152 = vst [vmem:[#allocation7] sm:$0xff] %v149_v30 }
 0x177   :  { %306 = shalt.err (!%p303_p6)
}
 0x178   :  { %s307_s18 = scalar_lea.hbm %s403_s3, 128 }
 0x179   :  { %p308_p7 = scmp.ne.s32.totalorder %s403_s3, %s307_s18  ;;  %p311_p8 = scmp.lt.u32.totalorder %s307_s18, %s403_s3 }
 0x17b   :  { %p313_p9 = pnand %p311_p8, %p308_p7 }
 0x17d   :  { %316 = shalt.err (!%p313_p9)
}
 0x17e   :  { %162 = dma.vmem_to_hbm [thread:$0]  %s160_s14, 128, %s403_s3, [#allocation4]  }
 0x17f   :  { %321 = dma.done.wait [#allocation4], 128  }
 0x180   :  { %322 = vsyncadd [#allocation4], 4294967168 }
 0x181   :  { %166 = vsyncpa [#allocation3], 1 }
 0x182   :  { %167 = vsyncpa [#allocation6], 1 }
 0x183   :  { %168 = vsyncpa [#allocation4], 1 }

</bundles_post_ra>
